<compile_context>
chip_gen: v5e
topology: v5e:2x2
jax: 0.10.0
libtpu: 0.0.40
codegen_flags: <defaults>
</compile_context>

<pallas_src>
import functools
import math

import jax
import jax.numpy as jnp
from jax.experimental import pallas as pl
from jax.experimental.pallas import tpu as pltpu

BN_EPS = 1e-5
PAD = 128            # lane width: every feature dim is zero-padded to this
VEC_ROWS = 8         # sublane-aligned rows per layer in the packed vector slab
ROW_GAMMA, ROW_BETA, ROW_BIAS = 0, 1, 2


def _actor_fused_kernel(x_ref, w_ref, vec_ref, o_ref, xpad_ref, *,
                        activations, out_dim):
    """Fused (BatchNorm1d(train) -> Linear -> activation) for every layer.

    x_ref   : (B, state_dim)      raw, unpadded input state
    w_ref   : (L, PAD, PAD)       W_i^T, zero-padded to 128x128 each
    vec_ref : (L, VEC_ROWS, PAD)  rows 0/1/2 = gamma_i / beta_i / bias_i
    o_ref   : (B, out_dim)        unpadded output (final action)
    xpad_ref: (B, PAD)            VMEM scratch used to lane-pad the input
    """
    B, din = x_ref.shape
    inv_n = 1.0 / B

    # Lane-pad the input inside the kernel (fuses the former wrapper jnp.pad).
    xpad_ref[...] = jnp.zeros_like(xpad_ref)
    xpad_ref[:, :din] = x_ref[...].astype(jnp.float32)
    x = xpad_ref[...]                                            # (B, PAD)

    for i, act in enumerate(activations):
        vec = vec_ref[i]                                         # (VEC_ROWS, PAD)
        gamma = vec[ROW_GAMMA:ROW_GAMMA + 1, :]                  # (1, PAD)
        beta = vec[ROW_BETA:ROW_BETA + 1, :]                     # (1, PAD)
        bias = vec[ROW_BIAS:ROW_BIAS + 1, :]                     # (1, PAD)

        # --- BatchNorm1d (training mode, biased variance) ---
        # E[x^2] - mean^2 form: s1 and s2 are independent reductions that can
        # overlap across the XLUs, instead of the serial mean->center->reduce
        # chain.  Clamp var at 0 to guard against tiny negative cancellation.
        s1 = jnp.sum(x, axis=0, keepdims=True)                   # (1, PAD)
        s2 = jnp.sum(x * x, axis=0, keepdims=True)               # (1, PAD)
        mean = s1 * inv_n
        var = jnp.maximum(s2 * inv_n - mean * mean, 0.0)
        # Fold gamma/mean/var/beta into a single per-feature FMA.
        scale = gamma * jax.lax.rsqrt(var + BN_EPS)              # (1, PAD)
        shift = beta - mean * scale                              # (1, PAD)
        x_hat = x * scale + shift                                # one FMA/elem
        # Padded lanes: gamma = 0 -> scale = 0, shift = 0 -> x_hat stays 0.

        # --- Linear (W already transposed to (Din, Dout), zero padded) ---
        y = jnp.dot(x_hat, w_ref[i],
                    preferred_element_type=jnp.float32) + bias

        # --- activation ---
        if act == "linear":
            pass
        elif act == "relu":
            y = jnp.maximum(y, 0.0)
        elif act == "tanh":
            y = jnp.tanh(y)
        else:
            # TODO(synk): generic getattr(F, name) activations beyond
            # relu/tanh/linear are not implemented in the kernel.
            raise NotImplementedError(f"activation {act!r} not supported")

        x = y

    # Emit the unpadded action directly (fuses the former wrapper slice).
    o_ref[...] = x[:, :out_dim].astype(o_ref.dtype)


def init_actor_params(key, layers, fl_init):
    """Deterministic parameter init mirroring ActorNet.__init__ (unpadded).

    Hidden layers: fan-in uniform(-1/sqrt(in), 1/sqrt(in)) for W and b.
    Final layer:   uniform(-fl_init, fl_init) for W and b.
    BatchNorm1d:   weight(gamma)=1, bias(beta)=0.
    """
    params = []
    n_layers = len(layers) - 1
    for i in range(n_layers):
        din, dout = layers[i], layers[i + 1]
        key, kw, kb = jax.random.split(key, 3)
        rng = fl_init if (i + 1 == n_layers) else 1.0 / math.sqrt(din)
        w = jax.random.uniform(kw, (dout, din), jnp.float32, -rng, rng)
        b = jax.random.uniform(kb, (dout,), jnp.float32, -rng, rng)
        params.append({
            "w": w,                                   # (dout, din), PyTorch layout
            "b": b,                                   # (dout,)
            "gamma": jnp.ones((din,), jnp.float32),
            "beta": jnp.zeros((din,), jnp.float32),
        })
    return params


def pack_params_for_kernel(params):
    """Pack all per-layer parameters into two arrays (3 kernel operands total).

    w_stack  : (L, PAD, PAD)       W_i^T zero-padded
    vec_stack: (L, VEC_ROWS, PAD)  rows 0/1/2 = gamma/beta/bias, zero-padded
    """
    n_layers = len(params)
    w_stack = jnp.zeros((n_layers, PAD, PAD), jnp.float32)
    vec_stack = jnp.zeros((n_layers, VEC_ROWS, PAD), jnp.float32)
    for i, p in enumerate(params):
        dout, din = p["w"].shape
        assert din <= PAD and dout <= PAD, "feature dim exceeds 128-lane padding"
        w_stack = w_stack.at[i, :din, :dout].set(jnp.transpose(p["w"]))
        vec_stack = vec_stack.at[i, ROW_GAMMA, :din].set(p["gamma"])
        vec_stack = vec_stack.at[i, ROW_BETA, :din].set(p["beta"])
        vec_stack = vec_stack.at[i, ROW_BIAS, :dout].set(p["b"])
    return w_stack, vec_stack


def actor_net_forward(state, w_stack, vec_stack, activations, out_dim):
    """Single fused, grid-less pallas_call over all layers; returns (B, out_dim)."""
    B, _ = state.shape
    # PyTorch BatchNorm1d in training mode rejects batch size 1.
    assert B > 1, "BatchNorm1d (training mode) requires batch size > 1"

    kernel = functools.partial(_actor_fused_kernel,
                               activations=tuple(activations),
                               out_dim=out_dim)
    return pl.pallas_call(
        kernel,
        out_shape=jax.ShapeDtypeStruct((B, out_dim), jnp.float32),
        scratch_shapes=[pltpu.VMEM((B, PAD), jnp.float32)],
    )(state.astype(jnp.float32), w_stack, vec_stack)


def actor_net_reference(state, params, activations):
    """Pure-JAX reference (unpadded, textbook BN formulation) for validation."""
    x = state
    for p, act in zip(params, activations):
        mean = jnp.mean(x, axis=0, keepdims=True)
        var = jnp.mean((x - mean) ** 2, axis=0, keepdims=True)
        xh = (x - mean) / jnp.sqrt(var + BN_EPS)
        xh = xh * p["gamma"][None, :] + p["beta"][None, :]
        y = xh @ p["w"].T + p["b"][None, :]
        if act == "relu":
            y = jnp.maximum(y, 0.0)
        elif act == "tanh":
            y = jnp.tanh(y)
        x = y
    return x


if __name__ == "__main__":
    # Small DDPG-style actor: state_dim=16 -> 64 -> 64 -> action_dim=8
    layers = [16, 64, 64, 8]
    activations = ["relu", "relu", "tanh"]
    fl_init = 3e-3
    batch = 8

    key = jax.random.PRNGKey(0)
    key, k_state = jax.random.split(key)
    state = jax.random.normal(k_state, (batch, layers[0]), jnp.float32)

    params = init_actor_params(key, layers, fl_init)
    w_stack, vec_stack = pack_params_for_kernel(params)

    out = actor_net_forward(state, w_stack, vec_stack, activations, layers[-1])
    out = jax.block_until_ready(out)

    ref = actor_net_reference(state, params, activations)
    assert out.shape == (batch, layers[-1])
    assert jnp.allclose(out, ref, atol=1e-4, rtol=1e-4), "mismatch vs reference"

    print("KERNEL_OK")
</pallas_src>

<mosaic_0001>
module attributes {stable_mosaic.version = 11 : i64} {
  func.func @_actor_fused_kernel(%arg0: memref<8x16xf32, #tpu.memory_space<vmem>>, %arg1: memref<3x128x128xf32, #tpu.memory_space<vmem>>, %arg2: memref<3x8x128xf32, #tpu.memory_space<vmem>>, %arg3: memref<8x8xf32, #tpu.memory_space<vmem>>, %arg4: memref<8x128xf32, #tpu.memory_space<vmem>>) attributes {dimension_semantics = [], scalar_prefetch = 0 : i64, scratch_operands = 1 : i64, tpu.core_type = #tpu.core_type<tc>} {
    %cst = arith.constant 0.000000e+00 : f32
    %0 = vector.broadcast %cst : f32 to vector<8x128xf32>
    %c0 = arith.constant 0 : index
    %c0_0 = arith.constant 0 : index
    %1 = vector.load %arg4[%c0, %c0_0] : memref<8x128xf32, #tpu.memory_space<vmem>>, vector<8x128xf32>
    tpu.vector_store %arg4[%c0, %c0_0], %0 {strides = array<i32>} : memref<8x128xf32, #tpu.memory_space<vmem>>, vector<8x128xf32>,
    %c0_1 = arith.constant 0 : index
    %c0_2 = arith.constant 0 : index
    %2 = vector.load %arg0[%c0_1, %c0_2] : memref<8x16xf32, #tpu.memory_space<vmem>>, vector<8x16xf32>
    %c0_3 = arith.constant 0 : index
    %c0_4 = arith.constant 0 : index
    %3 = vector.load %arg4[%c0_3, %c0_4] : memref<8x128xf32, #tpu.memory_space<vmem>>, vector<8x16xf32>
    tpu.vector_store %arg4[%c0_3, %c0_4], %2 {strides = array<i32>} : memref<8x128xf32, #tpu.memory_space<vmem>>, vector<8x16xf32>,
    %c0_5 = arith.constant 0 : index
    %c0_6 = arith.constant 0 : index
    %4 = vector.load %arg4[%c0_5, %c0_6] : memref<8x128xf32, #tpu.memory_space<vmem>>, vector<8x128xf32>
    %c0_7 = arith.constant 0 : index
    %c0_8 = arith.constant 0 : index
    %c0_9 = arith.constant 0 : index
    %5 = vector.load %arg2[%c0_7, %c0_8, %c0_9] : memref<3x8x128xf32, #tpu.memory_space<vmem>>, vector<1x8x128xf32>
    %6 = vector.shape_cast %5 : vector<1x8x128xf32> to vector<8x128xf32>
    %7 = vector.extract_strided_slice %6 {offsets = [0, 0], sizes = [1, 128], strides = [1, 1]} : vector<8x128xf32> to vector<1x128xf32>
    %8 = vector.extract_strided_slice %6 {offsets = [1, 0], sizes = [1, 128], strides = [1, 1]} : vector<8x128xf32> to vector<1x128xf32>
    %9 = vector.extract_strided_slice %6 {offsets = [2, 0], sizes = [1, 128], strides = [1, 1]} : vector<8x128xf32> to vector<1x128xf32>
    %cst_10 = arith.constant dense<0.000000e+00> : vector<128xf32>
    %10 = vector.multi_reduction <add>, %4, %cst_10 [0] : vector<8x128xf32> to vector<128xf32>
    %11 = vector.shape_cast %10 : vector<128xf32> to vector<1x128xf32>
    %12 = arith.mulf %4, %4 : vector<8x128xf32>
    %cst_11 = arith.constant dense<0.000000e+00> : vector<128xf32>
    %13 = vector.multi_reduction <add>, %12, %cst_11 [0] : vector<8x128xf32> to vector<128xf32>
    %14 = vector.shape_cast %13 : vector<128xf32> to vector<1x128xf32>
    %cst_12 = arith.constant 1.250000e-01 : f32
    %15 = vector.broadcast %cst_12 : f32 to vector<1x128xf32>
    %16 = arith.mulf %11, %15 : vector<1x128xf32>
    %cst_13 = arith.constant 1.250000e-01 : f32
    %17 = vector.broadcast %cst_13 : f32 to vector<1x128xf32>
    %18 = arith.mulf %14, %17 : vector<1x128xf32>
    %19 = arith.mulf %16, %16 : vector<1x128xf32>
    %20 = arith.subf %18, %19 : vector<1x128xf32>
    %cst_14 = arith.constant 0.000000e+00 : f32
    %21 = vector.broadcast %cst_14 : f32 to vector<1x128xf32>
    %22 = arith.maximumf %20, %21 : vector<1x128xf32>
    %cst_15 = arith.constant 9.99999974E-6 : f32
    %23 = vector.broadcast %cst_15 : f32 to vector<1x128xf32>
    %24 = arith.addf %22, %23 : vector<1x128xf32>
    %25 = math.rsqrt %24 : vector<1x128xf32>
    %26 = arith.mulf %7, %25 : vector<1x128xf32>
    %27 = arith.mulf %16, %26 : vector<1x128xf32>
    %28 = arith.subf %8, %27 : vector<1x128xf32>
    %29 = vector.broadcast %26 : vector<1x128xf32> to vector<8x128xf32>
    %30 = arith.mulf %4, %29 : vector<8x128xf32>
    %31 = vector.broadcast %28 : vector<1x128xf32> to vector<8x128xf32>
    %32 = arith.addf %30, %31 : vector<8x128xf32>
    %c0_16 = arith.constant 0 : index
    %c0_17 = arith.constant 0 : index
    %c0_18 = arith.constant 0 : index
    %33 = vector.load %arg1[%c0_16, %c0_17, %c0_18] : memref<3x128x128xf32, #tpu.memory_space<vmem>>, vector<1x128x128xf32>
    %34 = vector.shape_cast %33 : vector<1x128x128xf32> to vector<128x128xf32>
    %cst_19 = arith.constant dense<0.000000e+00> : vector<8x128xf32>
    %35 = tpu.matmul %32, %34, %cst_19 {dimension_numbers = #tpu.dot_dimension_numbers<[1], [0], [0], [1], [0, 0, 1, 1], [], []>} : vector<8x128xf32>, vector<128x128xf32>, vector<8x128xf32> -> vector<8x128xf32>
    %36 = vector.broadcast %9 : vector<1x128xf32> to vector<8x128xf32>
    %37 = arith.addf %35, %36 : vector<8x128xf32>
    %cst_20 = arith.constant 0.000000e+00 : f32
    %38 = vector.broadcast %cst_20 : f32 to vector<8x128xf32>
    %39 = arith.maximumf %37, %38 : vector<8x128xf32>
    %c1 = arith.constant 1 : index
    %c0_21 = arith.constant 0 : index
    %c0_22 = arith.constant 0 : index
    %40 = vector.load %arg2[%c1, %c0_21, %c0_22] : memref<3x8x128xf32, #tpu.memory_space<vmem>>, vector<1x8x128xf32>
    %41 = vector.shape_cast %40 : vector<1x8x128xf32> to vector<8x128xf32>
    %42 = vector.extract_strided_slice %41 {offsets = [0, 0], sizes = [1, 128], strides = [1, 1]} : vector<8x128xf32> to vector<1x128xf32>
    %43 = vector.extract_strided_slice %41 {offsets = [1, 0], sizes = [1, 128], strides = [1, 1]} : vector<8x128xf32> to vector<1x128xf32>
    %44 = vector.extract_strided_slice %41 {offsets = [2, 0], sizes = [1, 128], strides = [1, 1]} : vector<8x128xf32> to vector<1x128xf32>
    %cst_23 = arith.constant dense<0.000000e+00> : vector<128xf32>
    %45 = vector.multi_reduction <add>, %39, %cst_23 [0] : vector<8x128xf32> to vector<128xf32>
    %46 = vector.shape_cast %45 : vector<128xf32> to vector<1x128xf32>
    %47 = arith.mulf %39, %39 : vector<8x128xf32>
    %cst_24 = arith.constant dense<0.000000e+00> : vector<128xf32>
    %48 = vector.multi_reduction <add>, %47, %cst_24 [0] : vector<8x128xf32> to vector<128xf32>
    %49 = vector.shape_cast %48 : vector<128xf32> to vector<1x128xf32>
    %cst_25 = arith.constant 1.250000e-01 : f32
    %50 = vector.broadcast %cst_25 : f32 to vector<1x128xf32>
    %51 = arith.mulf %46, %50 : vector<1x128xf32>
    %cst_26 = arith.constant 1.250000e-01 : f32
    %52 = vector.broadcast %cst_26 : f32 to vector<1x128xf32>
    %53 = arith.mulf %49, %52 : vector<1x128xf32>
    %54 = arith.mulf %51, %51 : vector<1x128xf32>
    %55 = arith.subf %53, %54 : vector<1x128xf32>
    %cst_27 = arith.constant 0.000000e+00 : f32
    %56 = vector.broadcast %cst_27 : f32 to vector<1x128xf32>
    %57 = arith.maximumf %55, %56 : vector<1x128xf32>
    %cst_28 = arith.constant 9.99999974E-6 : f32
    %58 = vector.broadcast %cst_28 : f32 to vector<1x128xf32>
    %59 = arith.addf %57, %58 : vector<1x128xf32>
    %60 = math.rsqrt %59 : vector<1x128xf32>
    %61 = arith.mulf %42, %60 : vector<1x128xf32>
    %62 = arith.mulf %51, %61 : vector<1x128xf32>
    %63 = arith.subf %43, %62 : vector<1x128xf32>
    %64 = vector.broadcast %61 : vector<1x128xf32> to vector<8x128xf32>
    %65 = arith.mulf %39, %64 : vector<8x128xf32>
    %66 = vector.broadcast %63 : vector<1x128xf32> to vector<8x128xf32>
    %67 = arith.addf %65, %66 : vector<8x128xf32>
    %c1_29 = arith.constant 1 : index
    %c0_30 = arith.constant 0 : index
    %c0_31 = arith.constant 0 : index
    %68 = vector.load %arg1[%c1_29, %c0_30, %c0_31] : memref<3x128x128xf32, #tpu.memory_space<vmem>>, vector<1x128x128xf32>
    %69 = vector.shape_cast %68 : vector<1x128x128xf32> to vector<128x128xf32>
    %cst_32 = arith.constant dense<0.000000e+00> : vector<8x128xf32>
    %70 = tpu.matmul %67, %69, %cst_32 {dimension_numbers = #tpu.dot_dimension_numbers<[1], [0], [0], [1], [0, 0, 1, 1], [], []>} : vector<8x128xf32>, vector<128x128xf32>, vector<8x128xf32> -> vector<8x128xf32>
    %71 = vector.broadcast %44 : vector<1x128xf32> to vector<8x128xf32>
    %72 = arith.addf %70, %71 : vector<8x128xf32>
    %cst_33 = arith.constant 0.000000e+00 : f32
    %73 = vector.broadcast %cst_33 : f32 to vector<8x128xf32>
    %74 = arith.maximumf %72, %73 : vector<8x128xf32>
    %c2 = arith.constant 2 : index
    %c0_34 = arith.constant 0 : index
    %c0_35 = arith.constant 0 : index
    %75 = vector.load %arg2[%c2, %c0_34, %c0_35] : memref<3x8x128xf32, #tpu.memory_space<vmem>>, vector<1x8x128xf32>
    %76 = vector.shape_cast %75 : vector<1x8x128xf32> to vector<8x128xf32>
    %77 = vector.extract_strided_slice %76 {offsets = [0, 0], sizes = [1, 128], strides = [1, 1]} : vector<8x128xf32> to vector<1x128xf32>
    %78 = vector.extract_strided_slice %76 {offsets = [1, 0], sizes = [1, 128], strides = [1, 1]} : vector<8x128xf32> to vector<1x128xf32>
    %79 = vector.extract_strided_slice %76 {offsets = [2, 0], sizes = [1, 128], strides = [1, 1]} : vector<8x128xf32> to vector<1x128xf32>
    %cst_36 = arith.constant dense<0.000000e+00> : vector<128xf32>
    %80 = vector.multi_reduction <add>, %74, %cst_36 [0] : vector<8x128xf32> to vector<128xf32>
    %81 = vector.shape_cast %80 : vector<128xf32> to vector<1x128xf32>
    %82 = arith.mulf %74, %74 : vector<8x128xf32>
    %cst_37 = arith.constant dense<0.000000e+00> : vector<128xf32>
    %83 = vector.multi_reduction <add>, %82, %cst_37 [0] : vector<8x128xf32> to vector<128xf32>
    %84 = vector.shape_cast %83 : vector<128xf32> to vector<1x128xf32>
    %cst_38 = arith.constant 1.250000e-01 : f32
    %85 = vector.broadcast %cst_38 : f32 to vector<1x128xf32>
    %86 = arith.mulf %81, %85 : vector<1x128xf32>
    %cst_39 = arith.constant 1.250000e-01 : f32
    %87 = vector.broadcast %cst_39 : f32 to vector<1x128xf32>
    %88 = arith.mulf %84, %87 : vector<1x128xf32>
    %89 = arith.mulf %86, %86 : vector<1x128xf32>
    %90 = arith.subf %88, %89 : vector<1x128xf32>
    %cst_40 = arith.constant 0.000000e+00 : f32
    %91 = vector.broadcast %cst_40 : f32 to vector<1x128xf32>
    %92 = arith.maximumf %90, %91 : vector<1x128xf32>
    %cst_41 = arith.constant 9.99999974E-6 : f32
    %93 = vector.broadcast %cst_41 : f32 to vector<1x128xf32>
    %94 = arith.addf %92, %93 : vector<1x128xf32>
    %95 = math.rsqrt %94 : vector<1x128xf32>
    %96 = arith.mulf %77, %95 : vector<1x128xf32>
    %97 = arith.mulf %86, %96 : vector<1x128xf32>
    %98 = arith.subf %78, %97 : vector<1x128xf32>
    %99 = vector.broadcast %96 : vector<1x128xf32> to vector<8x128xf32>
    %100 = arith.mulf %74, %99 : vector<8x128xf32>
    %101 = vector.broadcast %98 : vector<1x128xf32> to vector<8x128xf32>
    %102 = arith.addf %100, %101 : vector<8x128xf32>
    %c2_42 = arith.constant 2 : index
    %c0_43 = arith.constant 0 : index
    %c0_44 = arith.constant 0 : index
    %103 = vector.load %arg1[%c2_42, %c0_43, %c0_44] : memref<3x128x128xf32, #tpu.memory_space<vmem>>, vector<1x128x128xf32>
    %104 = vector.shape_cast %103 : vector<1x128x128xf32> to vector<128x128xf32>
    %cst_45 = arith.constant dense<0.000000e+00> : vector<8x128xf32>
    %105 = tpu.matmul %102, %104, %cst_45 {dimension_numbers = #tpu.dot_dimension_numbers<[1], [0], [0], [1], [0, 0, 1, 1], [], []>} : vector<8x128xf32>, vector<128x128xf32>, vector<8x128xf32> -> vector<8x128xf32>
    %106 = vector.broadcast %79 : vector<1x128xf32> to vector<8x128xf32>
    %107 = arith.addf %105, %106 : vector<8x128xf32>
    %108 = math.tanh %107 : vector<8x128xf32>
    %109 = vector.extract_strided_slice %108 {offsets = [0, 0], sizes = [8, 8], strides = [1, 1]} : vector<8x128xf32> to vector<8x8xf32>
    %c0_46 = arith.constant 0 : index
    %c0_47 = arith.constant 0 : index
    %110 = vector.load %arg3[%c0_46, %c0_47] : memref<8x8xf32, #tpu.memory_space<vmem>>, vector<8x8xf32>
    tpu.vector_store %arg3[%c0_46, %c0_47], %109 {strides = array<i32>} : memref<8x8xf32, #tpu.memory_space<vmem>>, vector<8x8xf32>,
    return
  }
}

</mosaic_0001>

<bundles_post_ra>
// kernel: tpu_custom_call.1
= control target key start
LH: loop header
LB: loop body
LE: loop exit
PB: predicated region body
PF: predicated region fallthrough
CT: control target
= control target key end

     0   :  { %8 = vsyncpa [#allocation4], 0  ;;  %s479_s0 = inlined_call_operand.hbm [shape: f32[8,16], index: 0, kind: input, shape index: {}]   ;;  %s480_s1 = inlined_call_operand.hbm [shape: f32[3,128,128], index: 1, kind: input, shape index: {}]   ;;  %s481_s2 = inlined_call_operand.hbm [shape: f32[3,8,128], index: 2, kind: input, shape index: {}]   ;;  %s482_s3 = inlined_call_operand.hbm [shape: f32[8,8], index: 3, kind: output, shape index: {}]  }
   0x1   :  { %9 = vsyncpa [#allocation7], 0  ;;  %s26_s14 = sshll.u32 %s480_s1, 4  ;;  %s27_s14 = int_to_ptr.hbm [resolvable:$true] %s26_s14 }
   0x2   :  { %10 = vsyncpa [#allocation5], 0  ;;  %s440_s15 = smov [#allocation6]   ;;  %s16_s19 = sshll.u32 %s479_s0, 4  ;;  %s17_s19 = int_to_ptr.hbm [resolvable:$true] %s16_s19 }
   0x3   :  { %s28_s16 = sshll.u32 %s440_s15, 4  ;;  %s441_s20 = smov 128   ;;  %s29_s16 = int_to_ptr.vmem [resolvable:$true] %s28_s16 }
   0x4   :  { %s442_s21 = smov 8   ;;  %s443_s22 = smov [#allocation3]  }
   0x5   :  { %34 = dma.hbm_to_vmem [thread:$0]  %s27_s14, 6144, %s29_s16, [#allocation7], %s441_s20, %s441_s20, %s442_s21  }
   0x6   :  { %s18_s23 = sshll.u32 %s443_s22, 4  ;;  %s39_s26 = sshll.u32 %s481_s2, 4  ;;  %s19_s23 = int_to_ptr.vmem [resolvable:$true] %s18_s23  ;;  %s40_s26 = int_to_ptr.hbm [resolvable:$true] %s39_s26 }
   0x7   :  { %21 = dma.hbm_to_vmem [thread:$0]  %s17_s19, 128, %s19_s23, [#allocation4]  }
   0x8   :  { %s444_s1 = smov [#allocation8]  }
   0x9   :  { %s41_s27 = sshll.u32 %s444_s1, 4  ;;  %s42_s27 = int_to_ptr.vmem [resolvable:$true] %s41_s27 }
   0xa   :  { %47 = dma.hbm_to_vmem [thread:$0]  %s40_s26, 384, %s42_s27, [#allocation7], %s441_s20, %s441_s20, %s442_s21  }
   0xb   :  { %434 = dma.done.wait [#allocation4], 128  }
   0xc   :  { %435 = vsyncadd [#allocation4], 4294967168 }
   0xd   :  { %436 = dma.done.wait [#allocation7], 6528  }
   0xe   :  { %437 = vsyncadd [#allocation7], 4294960768  ;;  %v445_v0 = vmov 0.0   ;;  %v120_v1 = vld [vmem:[#allocation6 + $0x78] sm:$0xff]  ;;  %v119_v2 = vld [vmem:[#allocation6 + $0x70] sm:$0xff]  ;;  %vm62_vm0 = vcmask 130048  }
   0xf   :  { %60 = vst [vmem:[#allocation2] sm:$0xff] %v445_v0  ;;  %122 = vmatpush.msra.mxu0 %v120_v1  ;;  %v118_v3 = vld [vmem:[#allocation6 + $0x68] sm:$0xff]  ;;  %v117_v4 = vld [vmem:[#allocation6 + $0x60] sm:$0xff]  ;;  %v61_v5 = vld [vmem:[#allocation3] sm:$0xff]  ;;  %s446_s0 = smov [#allocation9]   ;;  %s312_s30 = sshll.u32 %s482_s3, 4  ;;  %s313_s30 = int_to_ptr.hbm [resolvable:$true] %s312_s30 }
  0x10   :  { %v116_v6 = vld [vmem:[#allocation6 + $0x58] sm:$0xff]  ;;  %63 = vst.msk [vmem:[#allocation2] sm:$0xff] %vm62_vm0, %v61_v5  ;;  %v115_v7 = vld [vmem:[#allocation6 + $0x50] sm:$0xff]  ;;  %v114_v8 = vld [vmem:[#allocation6 + $0x48] sm:$0xff]  ;;  %s310_s2 = sshll.u32 %s446_s0, 4  ;;  %vm303_vm10 = vcmask 64512   ;;  %s311_s2 = int_to_ptr.vmem [resolvable:$true] %s310_s2 }
  0x11   :  { %123 = vmatpush.msra.mxu0 %v119_v2  ;;  %v113_v9 = vld [vmem:[#allocation6 + $0x40] sm:$0xff]  ;;  %v112_v11 = vld [vmem:[#allocation6 + $0x38] sm:$0xff]  ;;  %v111_v14 = vld [vmem:[#allocation6 + $0x30] sm:$0xff] }
  0x12   :  { %v110_v17 = vld [vmem:[#allocation6 + $0x28] sm:$0xff]  ;;  %v109_v20 = vld [vmem:[#allocation6 + $0x20] sm:$0xff]  ;;  %v108_v23 = vld [vmem:[#allocation6 + $0x18] sm:$0xff] }
  0x13   :  { %124 = vmatpush.msra.mxu0 %v118_v3  ;;  %v107_v26 = vld [vmem:[#allocation6 + $0x10] sm:$0xff]  ;;  %v106_v29 = vld [vmem:[#allocation6 + $0x8] sm:$0xff]  ;;  %v105_v32 = vld [vmem:[#allocation6] sm:$0xff] }
  0x14   :  { %v65_v43 = vld [vmem:[#allocation8] sm:$0xff]  ;;  %v200_v54 = vld [vmem:[#allocation6 + $0xf8] sm:$0xff]  ;;  %v199_v55 = vld [vmem:[#allocation6 + $0xf0] sm:$0xff] }
  0x15   :  { %125 = vmatpush.msra.mxu0 %v117_v4  ;;  %202 = vmatpush.msra.mxu1 %v200_v54  ;;  %v198_v56 = vld [vmem:[#allocation6 + $0xe8] sm:$0xff]  ;;  %v197_v57 = vld [vmem:[#allocation6 + $0xe0] sm:$0xff]  ;;  %v196_v58 = vld [vmem:[#allocation6 + $0xd8] sm:$0xff]  ;;  %v121_v62 = vperm.slane %v65_v43, 2 }
  0x16   :  { %v195_v59 = vld [vmem:[#allocation6 + $0xd0] sm:$0xff]  ;;  %v194_v60 = vld [vmem:[#allocation6 + $0xc8] sm:$0xff]  ;;  %v193_v61 = vld [vmem:[#allocation6 + $0xc0] sm:$0xff] }
  0x17   :  { %126 = vmatpush.msra.mxu0 %v116_v6  ;;  %v64_v10 = vld [vmem:[#allocation2] sm:$0xff]  ;;  %203 = vmatpush.msra.mxu1 %v199_v55  ;;  %v192_v63 = vld [vmem:[#allocation6 + $0xb8] sm:$0xff]  ;;  %v190_v3 = vld [vmem:[#allocation6 + $0xa8] sm:$0xff] }
  0x18   :  { %v66_v12 = vrot.slane %v64_v10, 4  ;;  %v72_v13 = vmul.f32 %v64_v10, %v64_v10  ;;  %v191_v0 = vld [vmem:[#allocation6 + $0xb0] sm:$0xff]  ;;  %v189_v5 = vld [vmem:[#allocation6 + $0xa0] sm:$0xff]  ;;  %v272_v54 = vld [vmem:[#allocation6 + $0x138] sm:$0xff] }
  0x19   :  { %127 = vmatpush.msra.mxu0 %v115_v7  ;;  %204 = vmatpush.msra.mxu1 %v198_v56  ;;  %v271_v55 = vld [vmem:[#allocation6 + $0x130] sm:$0xff] }
  0x1a   :  { %v67_v15 = vadd.f32 %v66_v12, %v64_v10  ;;  %v73_v16 = vrot.slane %v72_v13, 4 }
  0x1b   :  { %128 = vmatpush.msra.mxu0 %v114_v8  ;;  %205 = vmatpush.msra.mxu1 %v197_v57  ;;  %v188_v8 = vld [vmem:[#allocation6 + $0x98] sm:$0xff] }
  0x1c   :  { %v68_v18 = vrot.slane %v67_v15, 2  ;;  %v74_v19 = vadd.f32 %v73_v16, %v72_v13  ;;  %v185_v16 = vld [vmem:[#allocation6 + $0x80] sm:$0xff] }
  0x1d   :  { %129 = vmatpush.msra.mxu0 %v113_v9  ;;  %206 = vmatpush.msra.mxu1 %v196_v58  ;;  %v270_v58 = vld [vmem:[#allocation6 + $0x128] sm:$0xff] }
  0x1e   :  { %v69_v21 = vadd.f32 %v68_v18, %v67_v15  ;;  %v75_v22 = vrot.slane %v74_v19, 2 }
  0x1f   :  { %130 = vmatpush.msra.mxu0 %v112_v11  ;;  %207 = vmatpush.msra.mxu1 %v195_v59  ;;  %v187_v11 = vld [vmem:[#allocation6 + $0x90] sm:$0xff] }
  0x20   :  { %v70_v24 = vrot.slane %v69_v21, 1  ;;  %v76_v25 = vadd.f32 %v75_v22, %v74_v19 }
  0x21   :  { %131 = vmatpush.msra.mxu0 %v111_v14  ;;  %208 = vmatpush.msra.mxu1 %v194_v60  ;;  %v186_v14 = vld [vmem:[#allocation6 + $0x88] sm:$0xff]  ;;  %v269_v60 = vld [vmem:[#allocation6 + $0x120] sm:$0xff] }
  0x22   :  { %v71_v27 = vadd.f32 %v70_v24, %v69_v21  ;;  %v77_v28 = vrot.slane %v76_v25, 1 }
  0x23   :  { %132 = vmatpush.msra.mxu0 %v110_v17  ;;  %209 = vmatpush.msra.mxu1 %v193_v61 }
  0x24   :  { %v78_v30 = vadd.f32 %v77_v28, %v76_v25  ;;  %v79_v31 = vmul.f32 0.125, %v71_v27 }
  0x25   :  { %133 = vmatpush.msra.mxu0 %v109_v20  ;;  %210 = vmatpush.msra.mxu1 %v192_v63  ;;  %v268_v63 = vld [vmem:[#allocation6 + $0x118] sm:$0xff] }
  0x26   :  { %v80_v33 = vmul.f32 0.125, %v78_v30  ;;  %v81_v34 = vmul.f32 %v79_v31, %v79_v31 }
  0x27   :  { %134 = vmatpush.msra.mxu0 %v108_v23  ;;  %211 = vmatpush.msra.mxu1 %v191_v0 }
  0x28   :  { %v82_v35 = vsub.f32 %v80_v33, %v81_v34  ;;  %v144_v34 = vld [vmem:[#allocation8 + $0x8] sm:$0xff] }
  0x29   :  { %135 = vmatpush.msra.mxu0 %v107_v26  ;;  %212 = vmatpush.msra.mxu1 %v190_v3 }
  0x2a   :  { %v83_v36 = vmax.f32 %v82_v35, 0.0 }
  0x2b   :  { %136 = vmatpush.msra.mxu0 %v106_v29  ;;  %213 = vmatpush.msra.mxu1 %v189_v5  ;;  %v266_v5 = vld [vmem:[#allocation6 + $0x108] sm:$0xff] }
  0x2c   :  { %v84_v37 = vadd.f32 1e-05, %v83_v36 }
  0x2d   :  { %137 = vmatpush.msra.mxu0 %v105_v32  ;;  %214 = vmatpush.msra.mxu1 %v188_v8 }
  0x2e   :  { %330 = vrsqrt.f32 %v84_v37  ;;  %vm91_vm1 = vweird.f32 %v84_v37 }
  0x2f   :  { %215 = vmatpush.msra.mxu1 %v187_v11 }
  0x31   :  { %216 = vmatpush.msra.mxu1 %v186_v14 }
  0x33   :  { %217 = vmatpush.msra.mxu1 %v185_v16 }
  0x34   :  { %v331_v38 = vpop.eup %330 }
  0x35   :  { %v86_v39 = vmul.f32 %v331_v38, %v84_v37  ;;  %vm92_vm2 = vweird.f32 %v331_v38 }
  0x36   :  { %vm93_vm3 = vmor %vm91_vm1, %vm92_vm2 }
  0x37   :  { %v87_v40 = vmul.f32 %v331_v38, %v86_v39 }
  0x39   :  { %v88_v41 = vmul.f32 0.5, %v87_v40 }
  0x3b   :  { %v89_v42 = vsub.f32 1.5, %v88_v41 }
  0x3d   :  { %v90_v44 = vmul.f32 %v331_v38, %v89_v42 }
  0x3f   :  { %v94_v45 = vsel %vm93_vm3, %v331_v38, %v90_v44 }
  0x40   :  { %v95_v46 = vmul.f32 %v94_v45, %v65_v43  ;;  %v280_v45 = vld [vmem:[#allocation6 + $0x178] sm:$0xff] }
  0x41   :  { %282 = vmatpush.msra.mxu2 %v280_v45 }
  0x42   :  { %v96_v47 = vmul.f32 %v95_v46, %v79_v31  ;;  %v101_v48 = vperm.slane %v95_v46, 0  ;;  %v279_v46 = vld [vmem:[#allocation6 + $0x170] sm:$0xff] }
  0x43   :  { %283 = vmatpush.msra.mxu2 %v279_v46 }
  0x44   :  { %v98_v49 = vrot.slane %v96_v47, 7  ;;  %v102_v51 = vmul.f32 %v101_v48, %v64_v10  ;;  %v278_v47 = vld [vmem:[#allocation6 + $0x168] sm:$0xff]  ;;  %v277_v48 = vld [vmem:[#allocation6 + $0x160] sm:$0xff] }
  0x45   :  { %284 = vmatpush.msra.mxu2 %v278_v47 }
  0x46   :  { %v100_v50 = vsub.f32 %v65_v43, %v98_v49  ;;  %v276_v49 = vld [vmem:[#allocation6 + $0x158] sm:$0xff] }
  0x47   :  { %285 = vmatpush.msra.mxu2 %v277_v48 }
  0x48   :  { %v103_v52 = vperm.slane %v100_v50, 1  ;;  %v275_v50 = vld [vmem:[#allocation6 + $0x150] sm:$0xff] }
  0x49   :  { %286 = vmatpush.msra.mxu2 %v276_v49 }
  0x4a   :  { %v104_v53 = vadd.f32 %v103_v52, %v102_v51  ;;  %v274_v51 = vld [vmem:[#allocation6 + $0x148] sm:$0xff]  ;;  %v273_v52 = vld [vmem:[#allocation6 + $0x140] sm:$0xff] }
  0x4b   :  { %287 = vmatpush.msra.mxu2 %v275_v50 }
  0x4c   :  { %138 = vmatmul.f32.vlgmr.msra.gmra.mxu0 %v104_v53  ;;  %v201_v53 = vperm.slane %v144_v34, 2 }
  0x4d   :  { %288 = vmatpush.msra.mxu2 %v274_v51 }
  0x4f   :  { %289 = vmatpush.msra.mxu2 %v273_v52 }
  0x51   :  { %290 = vmatpush.msra.mxu2 %v272_v54 }
  0x53   :  { %291 = vmatpush.msra.mxu2 %v271_v55 }
  0x55   :  { %292 = vmatpush.msra.mxu2 %v270_v58 }
  0x57   :  { %293 = vmatpush.msra.mxu2 %v269_v60 }
  0x59   :  { %294 = vmatpush.msra.mxu2 %v268_v63 }
  0xc9   :  { %v139_v1 = vpop.f32.mrf.mxu0 }
  0xca   :  { %v140_v2 = vadd.f32 %v139_v1, %v121_v62 }
  0xcc   :  { %v142_v4 = vmax.f32 %v140_v2, 0.0  ;;  %v267_v2 = vld [vmem:[#allocation6 + $0x110] sm:$0xff] }
  0xcd   :  { %295 = vmatpush.msra.mxu2 %v267_v2 }
  0xce   :  { %v145_v6 = vrot.slane %v142_v4, 4  ;;  %v151_v7 = vmul.f32 %v142_v4, %v142_v4 }
  0xcf   :  { %296 = vmatpush.msra.mxu2 %v266_v5 }
  0xd0   :  { %v146_v9 = vadd.f32 %v145_v6, %v142_v4  ;;  %v152_v10 = vrot.slane %v151_v7, 4 }
  0xd2   :  { %v147_v12 = vrot.slane %v146_v9, 2  ;;  %v153_v13 = vadd.f32 %v152_v10, %v151_v7  ;;  %v265_v7 = vld [vmem:[#allocation6 + $0x100] sm:$0xff] }
  0xd3   :  { %297 = vmatpush.msra.mxu2 %v265_v7 }
  0xd4   :  { %v154_v15 = vrot.slane %v153_v13, 2  ;;  %v148_v17 = vadd.f32 %v147_v12, %v146_v9 }
  0xd6   :  { %v155_v18 = vadd.f32 %v154_v15, %v153_v13  ;;  %v149_v19 = vrot.slane %v148_v17, 1 }
  0xd8   :  { %v156_v20 = vrot.slane %v155_v18, 1  ;;  %v150_v21 = vadd.f32 %v149_v19, %v148_v17 }
  0xda   :  { %v157_v22 = vadd.f32 %v156_v20, %v155_v18  ;;  %v158_v23 = vmul.f32 0.125, %v150_v21 }
  0xdc   :  { %v159_v24 = vmul.f32 0.125, %v157_v22  ;;  %v160_v25 = vmul.f32 %v158_v23, %v158_v23 }
  0xde   :  { %v161_v26 = vsub.f32 %v159_v24, %v160_v25  ;;  %v224_v25 = vld [vmem:[#allocation8 + $0x10] sm:$0xff] }
  0xe0   :  { %v162_v27 = vmax.f32 %v161_v26, 0.0 }
  0xe2   :  { %v163_v28 = vadd.f32 1e-05, %v162_v27 }
  0xe4   :  { %332 = vrsqrt.f32 %v163_v28  ;;  %vm170_vm5 = vweird.f32 %v163_v28 }
  0xea   :  { %v333_v29 = vpop.eup %332 }
  0xeb   :  { %v165_v30 = vmul.f32 %v333_v29, %v163_v28  ;;  %vm171_vm4 = vweird.f32 %v333_v29 }
  0xec   :  { %vm172_vm6 = vmor %vm170_vm5, %vm171_vm4 }
  0xed   :  { %v166_v31 = vmul.f32 %v333_v29, %v165_v30 }
  0xef   :  { %v167_v32 = vmul.f32 0.5, %v166_v31 }
  0xf1   :  { %v168_v33 = vsub.f32 1.5, %v167_v32 }
  0xf3   :  { %v169_v35 = vmul.f32 %v333_v29, %v168_v33 }
  0xf5   :  { %v173_v36 = vsel %vm172_vm6, %v333_v29, %v169_v35 }
  0xf6   :  { %v174_v37 = vmul.f32 %v173_v36, %v144_v34  ;;  %v281_v36 = vperm.slane %v224_v25, 2 }
  0xf8   :  { %v175_v38 = vmul.f32 %v174_v37, %v158_v23  ;;  %v180_v40 = vperm.slane %v174_v37, 0 }
  0xfa   :  { %v177_v39 = vrot.slane %v175_v38, 7  ;;  %v181_v42 = vmul.f32 %v180_v40, %v142_v4 }
  0xfc   :  { %v179_v41 = vsub.f32 %v144_v34, %v177_v39 }
  0xfe   :  { %v182_v43 = vperm.slane %v179_v41, 1 }
 0x100   :  { %v183_v44 = vadd.f32 %v182_v43, %v181_v42 }
 0x102   :  { %218 = vmatmul.f32.vlgmr.msra.gmra.mxu1 %v183_v44 }
 0x17f   :  { %v219_v56 = vpop.f32.mrf.mxu1 }
 0x180   :  { %v220_v57 = vadd.f32 %v219_v56, %v201_v53 }
 0x182   :  { %v222_v59 = vmax.f32 %v220_v57, 0.0 }
 0x184   :  { %v225_v61 = vrot.slane %v222_v59, 4  ;;  %v231_v62 = vmul.f32 %v222_v59, %v222_v59 }
 0x186   :  { %v226_v0 = vadd.f32 %v225_v61, %v222_v59  ;;  %v232_v1 = vrot.slane %v231_v62, 4 }
 0x188   :  { %v227_v3 = vrot.slane %v226_v0, 2  ;;  %v233_v4 = vadd.f32 %v232_v1, %v231_v62 }
 0x18a   :  { %v234_v6 = vrot.slane %v233_v4, 2  ;;  %v228_v8 = vadd.f32 %v227_v3, %v226_v0 }
 0x18c   :  { %v235_v9 = vadd.f32 %v234_v6, %v233_v4  ;;  %v229_v10 = vrot.slane %v228_v8, 1 }
 0x18e   :  { %v236_v11 = vrot.slane %v235_v9, 1  ;;  %v230_v12 = vadd.f32 %v229_v10, %v228_v8 }
 0x190   :  { %v237_v13 = vadd.f32 %v236_v11, %v235_v9  ;;  %v238_v14 = vmul.f32 0.125, %v230_v12 }
 0x192   :  { %v239_v15 = vmul.f32 0.125, %v237_v13  ;;  %v240_v16 = vmul.f32 %v238_v14, %v238_v14 }
 0x194   :  { %v241_v17 = vsub.f32 %v239_v15, %v240_v16 }
 0x196   :  { %v242_v18 = vmax.f32 %v241_v17, 0.0 }
 0x198   :  { %v243_v19 = vadd.f32 1e-05, %v242_v18 }
 0x19a   :  { %334 = vrsqrt.f32 %v243_v19  ;;  %vm250_vm8 = vweird.f32 %v243_v19 }
 0x1a0   :  { %v335_v20 = vpop.eup %334 }
 0x1a1   :  { %v245_v21 = vmul.f32 %v335_v20, %v243_v19  ;;  %vm251_vm7 = vweird.f32 %v335_v20 }
 0x1a2   :  { %vm252_vm9 = vmor %vm250_vm8, %vm251_vm7 }
 0x1a3   :  { %v246_v22 = vmul.f32 %v335_v20, %v245_v21 }
 0x1a5   :  { %v247_v23 = vmul.f32 0.5, %v246_v22 }
 0x1a7   :  { %v248_v24 = vsub.f32 1.5, %v247_v23 }
 0x1a9   :  { %v249_v26 = vmul.f32 %v335_v20, %v248_v24 }
 0x1ab   :  { %v253_v27 = vsel %vm252_vm9, %v335_v20, %v249_v26 }
 0x1ac   :  { %v254_v28 = vmul.f32 %v253_v27, %v224_v25 }
 0x1ae   :  { %v255_v29 = vmul.f32 %v254_v28, %v238_v14  ;;  %v260_v31 = vperm.slane %v254_v28, 0 }
 0x1b0   :  { %v257_v30 = vrot.slane %v255_v29, 7  ;;  %v261_v33 = vmul.f32 %v260_v31, %v222_v59 }
 0x1b2   :  { %v259_v32 = vsub.f32 %v224_v25, %v257_v30 }
 0x1b4   :  { %v262_v34 = vperm.slane %v259_v32, 1 }
 0x1b6   :  { %v263_v35 = vadd.f32 %v262_v34, %v261_v33 }
 0x1b8   :  { %298 = vmatmul.f32.vlgmr.msra.gmra.mxu2 %v263_v35 }
 0x23b   :  { %v299_v37 = vpop.f32.mrf.mxu2 }
 0x23c   :  { %v300_v38 = vadd.f32 %v299_v37, %v281_v36 }
 0x23e   :  { %336 = vtanh.f32 %v300_v38 }
 0x244   :  { %v337_v39 = vpop.eup %336 }
 0x245   :  { %304 = vst.msk [vmem:[#allocation9] sm:$0xff] %vm303_vm10, %v337_v39 }
 0x246   :  { %315 = dma.vmem_to_hbm [thread:$0]  %s311_s2, 128, %s313_s30, [#allocation5]  }
 0x247   :  { %438 = dma.done.wait [#allocation5], 128  }
 0x248   :  { %439 = vsyncadd [#allocation5], 4294967168 }
 0x249   :  { %320 = vsyncpa [#allocation4], 1 }
 0x24a   :  { %321 = vsyncpa [#allocation7], 1 }
 0x24b   :  { %322 = vsyncpa [#allocation5], 1 }

</bundles_post_ra>
